<compile_context>
chip_gen: v6e
topology: v6e:2x2x1
jax: 0.10.0
libtpu: 0.0.40
codegen_flags: <defaults>
</compile_context>

<pallas_src>
import jax
import jax.numpy as jnp
from jax.experimental import pallas as pl
from jax.experimental.pallas import tpu as pltpu


# --------------------------------------------------------------------------- #
# Kernels
# --------------------------------------------------------------------------- #
def _rotary_rows_kernel(inv_ref, out_ref):
    # out_ref: (TS, dim) tile of the (S, dim) table.
    # inv_ref: (1, dim) row = [inv_freq, inv_freq] pre-duplicated on the host,
    # so no lane-axis concatenate is needed inside the kernel.
    ts, d = out_ref.shape
    row0 = pl.program_id(0) * ts
    # seq index per row; int iota -> f32 (exact up to 2^24, asserted wrapper-side).
    seq = (jax.lax.broadcasted_iota(jnp.int32, (ts, d), 0) + row0).astype(jnp.float32)
    out_ref[...] = seq * inv_ref[...]


def _rotary_lane_dense_kernel(scale_ref, offset_ref, out_ref):
    # Lane-dense path for dim < 128 with 128 % dim == 0: the (S, dim) output is
    # viewed as (S*dim//128, 128) so every store is full 128-lane width.
    # For flat = r*128 + lane:  seq = r*(128//dim) + lane//dim  and the freq index
    # is lane % dim, so   out = r * scale[lane] + offset[lane]   with
    #   scale[lane]  = (128//dim) * inv[lane % dim]   (exact: 128//dim is pow2)
    #   offset[lane] = (lane//dim) * inv[lane % dim]
    # both precomputed on the host. Kernel = iota + add + convert + mul + add.
    tr, lanes = out_ref.shape
    row0 = pl.program_id(0) * tr
    r = (jax.lax.broadcasted_iota(jnp.int32, (tr, lanes), 0) + row0).astype(jnp.float32)
    out_ref[...] = r * scale_ref[...] + offset_ref[...]


# --------------------------------------------------------------------------- #
# Tiling helpers
# --------------------------------------------------------------------------- #
def _block_budget_and_vmem_limit():
    """Generation-aware output-block byte budget and vmem limit.

    Defaults (safe everywhere): 8 MiB blocks, 32 MiB scoped VMEM.
    On v7x-like chips (<= 64 MiB physical VMEM, ~3.2 TB/s per-TC HBM) use
    16 MiB blocks (32 MiB double-buffered) and raise the limit to 40 MiB.
    """
    block_bytes = 8 << 20
    vmem_limit = 32 << 20
    try:
        info = pltpu.get_tpu_info()
        vmem_cap = getattr(info, "vmem_capacity_bytes", None)
        if vmem_cap is not None and vmem_cap <= (64 << 20):
            block_bytes = 16 << 20
            vmem_limit = 40 << 20
    except Exception:
        pass  # conservative defaults are valid on every generation
    return block_bytes, vmem_limit


def _pick_row_tile(total_rows, row_bytes, block_bytes, min_split_bytes=2 << 20):
    """Pick a row tile (multiple of 8) for a store-bound (rows, lanes) output.

    * Normally the largest multiple-of-8 tile that fits `block_bytes`.
    * If the whole table fits in one block but is >= `min_split_bytes`, halve it
      so the grid has >= 2 steps (keeps both v7x TensorCores busy; negligible
      overhead elsewhere).
    * Tiny tables come back as a single full block (full-array block exception).
    """
    tile = max(8, (block_bytes // row_bytes // 8) * 8)
    if tile < total_rows:
        return tile
    total_bytes = total_rows * row_bytes
    if total_bytes >= min_split_bytes and total_rows >= 16:
        return max(8, pl.cdiv(pl.cdiv(total_rows, 2), 8) * 8)
    return total_rows


# --------------------------------------------------------------------------- #
# Wrapper
# --------------------------------------------------------------------------- #
def rotary_embedding(max_seq_len: int, dim: int) -> jnp.ndarray:
    assert dim % 2 == 0, "RotaryEmbedding requires an even dim"
    # seq index is materialized via int32 iota -> f32, exact only below 2^24.
    assert 1 <= max_seq_len < (1 << 24), "max_seq_len must be < 2^24 for exact f32 indices"
    half = dim // 2

    # Deterministic "parameter" from the module's __init__ (registered buffer),
    # pre-duplicated so the kernel needs no lane-axis concatenate.
    inv_freq = 1.0 / (10000.0 ** (jnp.arange(0, dim, 2, dtype=jnp.float32) / dim))
    inv_freq_full = jnp.concatenate([inv_freq, inv_freq]).reshape(1, dim)
    assert inv_freq_full.shape == (1, 2 * half)

    block_bytes, vmem_limit = _block_budget_and_vmem_limit()
    compiler_params = pltpu.CompilerParams(
        dimension_semantics=("parallel",),   # seq tiles are independent
        vmem_limit_bytes=vmem_limit,
    )

    lane_dense = (dim < 128) and (128 % dim == 0) and ((max_seq_len * dim) % 128 == 0)

    if lane_dense:
        k = 128 // dim
        rows = (max_seq_len * dim) // 128
        lane = jnp.arange(128, dtype=jnp.int32)
        inv_tiled = jnp.tile(inv_freq_full, (1, k))                       # (1, 128)
        scale = inv_tiled * float(k)                                      # exact (k pow2)
        offset = inv_tiled * (lane // dim).astype(jnp.float32)[None, :]   # (1, 128)

        tr = _pick_row_tile(rows, 128 * 4, block_bytes)
        grid = (pl.cdiv(rows, tr),)

        out_flat = pl.pallas_call(
            _rotary_lane_dense_kernel,
            out_shape=jax.ShapeDtypeStruct((rows, 128), jnp.float32),
            grid=grid,
            in_specs=[pl.BlockSpec((1, 128), lambda i: (0, 0)),
                      pl.BlockSpec((1, 128), lambda i: (0, 0))],
            out_specs=pl.BlockSpec((tr, 128), lambda i: (i, 0)),
            compiler_params=compiler_params,
        )(scale, offset)
        # Pure layout plumbing: row-major bytes of (rows, 128) == (S, dim).
        return out_flat.reshape(max_seq_len, dim)

    # Regular path (dim >= 128 or not lane-dense-compatible): tile the seq axis.
    ts = _pick_row_tile(max_seq_len, dim * 4, block_bytes)
    grid = (pl.cdiv(max_seq_len, ts),)

    out = pl.pallas_call(
        _rotary_rows_kernel,
        out_shape=jax.ShapeDtypeStruct((max_seq_len, dim), jnp.float32),
        grid=grid,
        in_specs=[pl.BlockSpec((1, dim), lambda i: (0, 0))],
        out_specs=pl.BlockSpec((ts, dim), lambda i: (i, 0)),
        compiler_params=compiler_params,
    )(inv_freq_full)
    return out


# --------------------------------------------------------------------------- #
# Pure-JAX reference
# --------------------------------------------------------------------------- #
def rotary_embedding_ref(max_seq_len: int, dim: int) -> jnp.ndarray:
    inv_freq = 1.0 / (10000.0 ** (jnp.arange(0, dim, 2, dtype=jnp.float32) / dim))
    seq = jnp.arange(max_seq_len, dtype=jnp.float32)
    freqs = jnp.einsum("i,j->ij", seq, inv_freq)
    return jnp.concatenate([freqs, freqs], axis=-1)


if __name__ == "__main__":
    # The module's forward takes no tensor input (only max_seq_len); the key is
    # created per the harness contract but there is nothing random to sample.
    key = jax.random.PRNGKey(0)
    del key

    cases = [
        (8, 32),        # small lane-dense path (matches flamingo's rotary dim 32)
        (16, 256),      # small regular path, full-width lanes
        (16384, 64),    # lane-dense, multi-step grid (split for >=2 steps)
        (4096, 384),    # regular path, dim % 128 != 0, split into 2 tiles
        (5000, 384),    # regular path, ragged last block
    ]
    for max_seq_len, dim in cases:
        out = jax.block_until_ready(rotary_embedding(max_seq_len, dim))
        ref = rotary_embedding_ref(max_seq_len, dim)
        assert out.shape == (max_seq_len, dim)
        assert out.dtype == jnp.float32
        assert jnp.allclose(out, ref, atol=1e-6, rtol=1e-6), (max_seq_len, dim)

    print("KERNEL_OK")
</pallas_src>

<mosaic_0001>
module attributes {stable_mosaic.version = 11 : i64} {
  func.func @_rotary_lane_dense_kernel(%arg0: i32, %arg1: memref<1x128xf32, #tpu.memory_space<vmem>>, %arg2: memref<1x128xf32, #tpu.memory_space<vmem>>, %arg3: memref<2x128xf32, #tpu.memory_space<vmem>>) attributes {dimension_semantics = [#tpu.dimension_semantics<parallel>], iteration_bounds = array<i64: 1>, scalar_prefetch = 0 : i64, scratch_operands = 0 : i64, tpu.core_type = #tpu.core_type<tc>, window_params = [{pipeline_mode = #tpu.pipeline_mode<synchronous>, transform_indices = @transform_0, window_bounds = array<i64: 1, 128>}, {pipeline_mode = #tpu.pipeline_mode<synchronous>, transform_indices = @transform_1, window_bounds = array<i64: 1, 128>}, {transform_indices = @transform_2, window_bounds = array<i64: 2, 128>}]} {
    %c2_i32 = arith.constant 2 : i32
    %0 = arith.muli %arg0, %c2_i32 : i32
    %1 = tpu.iota {dimensions = array<i32: 0>} : vector<2x128xi32>
    %2 = vector.broadcast %0 : i32 to vector<2x128xi32>
    %3 = arith.addi %1, %2 : vector<2x128xi32>
    %4 = arith.sitofp %3 : vector<2x128xi32> to vector<2x128xf32>
    %c0 = arith.constant 0 : index
    %c0_0 = arith.constant 0 : index
    %5 = vector.load %arg1[%c0, %c0_0] : memref<1x128xf32, #tpu.memory_space<vmem>>, vector<1x128xf32>
    %6 = vector.broadcast %5 : vector<1x128xf32> to vector<2x128xf32>
    %7 = arith.mulf %4, %6 : vector<2x128xf32>
    %c0_1 = arith.constant 0 : index
    %c0_2 = arith.constant 0 : index
    %8 = vector.load %arg2[%c0_1, %c0_2] : memref<1x128xf32, #tpu.memory_space<vmem>>, vector<1x128xf32>
    %9 = vector.broadcast %8 : vector<1x128xf32> to vector<2x128xf32>
    %10 = arith.addf %7, %9 : vector<2x128xf32>
    %c0_3 = arith.constant 0 : index
    %c0_4 = arith.constant 0 : index
    %11 = vector.load %arg3[%c0_3, %c0_4] : memref<2x128xf32, #tpu.memory_space<vmem>>, vector<2x128xf32>
    tpu.vector_store %arg3[%c0_3, %c0_4], %10 {strides = array<i32>} : memref<2x128xf32, #tpu.memory_space<vmem>>, vector<2x128xf32>,
    return
  }
  func.func @transform_0(%arg0: i32) -> (i32, i32) {
    %c0_i32 = arith.constant 0 : i32
    %c0_i32_0 = arith.constant 0 : i32
    %c0_i32_1 = arith.constant 0 : i32
    return %c0_i32, %c0_i32_0 : i32, i32
  }
  func.func @transform_1(%arg0: i32) -> (i32, i32) {
    %c0_i32 = arith.constant 0 : i32
    %c0_i32_0 = arith.constant 0 : i32
    %c0_i32_1 = arith.constant 0 : i32
    return %c0_i32, %c0_i32_0 : i32, i32
  }
  func.func @transform_2(%arg0: i32) -> (i32, i32) {
    %c0_i32 = arith.constant 0 : i32
    %c0_i32_0 = arith.constant 0 : i32
    return %arg0, %c0_i32 : i32, i32
  }
}

</mosaic_0001>

<bundles_post_ra>
// kernel: tpu_custom_call.1
= control target key start
LH: loop header
LB: loop body
LE: loop exit
PB: predicated region body
PF: predicated region fallthrough
CT: control target
= control target key end

     0   :  { %7 = vsyncpa [#allocation3], 0  ;;  %s136_s0 = inlined_call_operand.hbm [shape: f32[1,128], index: 0, kind: input, shape index: {}]   ;;  %s137_s1 = inlined_call_operand.vmem [shape: f32[1,128], index: 1, kind: input, shape index: {}]   ;;  %s138_s2 = inlined_call_operand.hbm [shape: f32[2,128], index: 2, kind: output, shape index: {}]  }
   0x1   :  { %8 = vsyncpa [#allocation4], 0  ;;  %s110_s9 = smov [#allocation2]  }
   0x2   :  { %s15_s10 = sshll.u32 %s110_s9, 4  ;;  %s16_s10 = int_to_ptr.vmem [resolvable:$true] %s15_s10 }
   0x3   :  { %s74_s11 = scalar_lea.vmem %s16_s10, 16  ;;  %s78_s12 = scalar_lea.vmem %s16_s10, 32 }
   0x4   :  { %p75_p0 = scmp.ne.s32.totalorder %s16_s10, %s74_s11  ;;  %p79_p1 = scmp.lt.s32.totalorder %s16_s10, %s16_s10 }
   0x5   :  { %p80_p2 = scmp.lt.s32.totalorder %s78_s12, %s74_s11 }
   0x7   :  { %p81_p3 = por %p80_p2, %p79_p1 }
   0x9   :  { %p82_p4 = pnand %p81_p3, %p75_p0 }
   0xb   :  { %85 = shalt.err (!%p82_p4)
}
   0xc   :  { %18 = dma.hbm_to_vmem [thread:$0]  %s136_s0, 16, %s16_s10, [#allocation3]  }
   0xd   :  { %106 = dma.done.wait [#allocation3], 16  }
   0xe   :  { %107 = vsyncadd [#allocation3], 4294967280  ;;  %v25_v0 = vlaneseq  ;;  %v62_v3 = vld [vmem:[#allocation2] ss:$0 sm:$0xff]  ;;  %s111_s17 = smov [#allocation5]  }
   0xf   :  { %v63_v4 = vld [vmem:[%s137_s1] ss:$0 sm:$0xff]  ;;  %s53_s18 = sshll.u32 %s111_s17, 4  ;;  %s54_s18 = int_to_ptr.vmem [resolvable:$true] %s53_s18 }
  0x10   :  { %v26_v1 = vshrl.u32 %v25_v0, 7  ;;  %s86_s19 = scalar_lea.vmem %s54_s18, 32  ;;  %p91_p6 = scmp.lt.s32.totalorder %s54_s18, %s54_s18 }
  0x11   :  { %p87_p5 = scmp.ne.s32.totalorder %s54_s18, %s86_s19  ;;  %p92_p7 = scmp.lt.s32.totalorder %s86_s19, %s86_s19 }
  0x12   :  { %v29_v2 = vcvt.s32.f32 %v26_v1 }
  0x13   :  { %p93_p8 = por %p92_p7, %p91_p6 }
  0x14   :  { %v37_v5 = vmul.f32 %v62_v3, %v29_v2 }
  0x15   :  { %p94_p9 = pnand %p93_p8, %p87_p5 }
  0x16   :  { %v45_v6 = vadd.f32 %v63_v4, %v37_v5 }
  0x18   :  { %46 = vst [vmem:[#allocation5] sm:$0x3] %v45_v6 }
  0x19   :  { %97 = shalt.err (!%p94_p9)
}
  0x1a   :  { %56 = dma.vmem_to_hbm [thread:$0]  %s54_s18, 32, %s138_s2, [#allocation4]  }
  0x1b   :  { %108 = dma.done.wait [#allocation4], 32  }
  0x1c   :  { %109 = vsyncadd [#allocation4], 4294967264 }
  0x1d   :  { %60 = vsyncpa [#allocation3], 1 }
  0x1e   :  { %61 = vsyncpa [#allocation4], 1 }

</bundles_post_ra>
